<compile_context>
chip_gen: v5e
topology: v5e:2x2
jax: 0.10.0
libtpu: 0.0.40
codegen_flags: <defaults>
</compile_context>

<pallas_src>
import jax
import jax.numpy as jnp
import numpy as np
from jax import lax
from jax.experimental import pallas as pl
from jax.experimental.pallas import tpu as pltpu

MARGIN = 1.0
LAMBDA_TRIPLET = 0.2
NORM_EPS = 1e-12     # F.normalize default eps
PD_EPS = 1e-6        # F.pairwise_distance default eps (added to the difference)


def _vn_triplet_kernel(feat_ref, lab_row_ref, lab_col_ref, base_ref, out_ref):
    f = feat_ref[...].astype(jnp.float32)                       # (B, H)
    B = f.shape[0]

    # F.normalize(x, dim=1): x / max(||x||, eps) == x * rsqrt(max(||x||^2, eps^2))
    # rsqrt goes to the EUP slot (free vs. a VPU divide over B*H elements).
    sumsq = jnp.sum(f * f, axis=1, keepdims=True)               # (B, 1)
    fn = f * lax.rsqrt(jnp.maximum(sumsq, NORM_EPS * NORM_EPS)) # (B, H)

    lab_r = lab_row_ref[...]                                    # (B, 1) int32
    lab_c = lab_col_ref[...]                                    # (1, B) int32
    nor_r = lab_r == 0                                          # (B, 1)
    vio_r = lab_r == 2                                          # (B, 1)

    # (2, B) group-membership matrix: row 0 -> label==0 (normal),
    #                                 row 1 -> label==2 (violation).
    rid2 = lax.broadcasted_iota(jnp.int32, (2, B), 0)
    masks = (jnp.broadcast_to(lab_c, (2, B)) == rid2 * 2).astype(jnp.float32)

    # Both group sums in one small MXU matmul: (2, B) @ (B, H) -> (2, H).
    sums = lax.dot_general(masks, fn, (((1,), (0,)), ((), ())),
                           preferred_element_type=jnp.float32)

    n_nor = jnp.sum(masks[0:1, :])                              # scalar counts
    n_vio = jnp.sum(masks[1:2, :])

    n_center = sums[0:1, :] / jnp.maximum(n_nor, 1.0)           # (1, H)
    v_center = sums[1:2, :] / jnp.maximum(n_vio, 1.0)           # (1, H)

    # F.pairwise_distance: ||x - y + eps||_2 along the feature dim.
    dn = fn - n_center + PD_EPS
    dv = fn - v_center + PD_EPS
    d_to_n = jnp.sqrt(jnp.sum(dn * dn, axis=1, keepdims=True))  # (B, 1)
    d_to_v = jnp.sqrt(jnp.sum(dv * dv, axis=1, keepdims=True))  # (B, 1)

    # relu(d(anchor, own_center) - d(anchor, other_center) + margin), gated per row.
    normal_hinge = jnp.where(nor_r, jnp.maximum(d_to_n - d_to_v + MARGIN, 0.0), 0.0)
    violation_hinge = jnp.where(vio_r, jnp.maximum(d_to_v - d_to_n + MARGIN, 0.0), 0.0)

    triplet = (jnp.sum(normal_hinge) / jnp.maximum(n_nor, 1.0)
               + jnp.sum(violation_hinge) / jnp.maximum(n_vio, 1.0))

    base = base_ref[0]
    has_both = jnp.logical_and(n_nor > 0.0, n_vio > 0.0)

    total = jnp.where(has_both, base + LAMBDA_TRIPLET * triplet, base)

    out_ref[0] = total
    out_ref[1] = jnp.where(has_both, triplet, 0.0)   # PyTorch early-return also reports 0.0
    out_ref[2] = base


@jax.jit
def violation_normal_triplet_loss(features, labels, base_loss):
    B, H = features.shape
    lab_row = labels.astype(jnp.int32).reshape(B, 1)
    lab_col = labels.astype(jnp.int32).reshape(1, B)
    base = jnp.asarray(base_loss, jnp.float32).reshape(1)

    itemsize = np.dtype(features.dtype).itemsize
    cost = pl.CostEstimate(
        flops=2 * 2 * B * H + 12 * B * H,        # tiny group-sum matmul + elementwise
        transcendentals=3 * B,                   # rsqrt + 2x sqrt per row
        bytes_accessed=B * H * itemsize + 2 * B * 4 + 4 + 3 * 4,
    )

    out = pl.pallas_call(
        _vn_triplet_kernel,
        out_shape=jax.ShapeDtypeStruct((3,), jnp.float32),
        in_specs=[
            pl.BlockSpec(memory_space=pltpu.MemorySpace.VMEM),   # features (native dtype)
            pl.BlockSpec(memory_space=pltpu.MemorySpace.VMEM),   # labels (B, 1)
            pl.BlockSpec(memory_space=pltpu.MemorySpace.VMEM),   # labels (1, B)
            pl.BlockSpec(memory_space=pltpu.MemorySpace.SMEM),   # base_loss scalar
        ],
        out_specs=pl.BlockSpec(memory_space=pltpu.MemorySpace.SMEM),
        cost_estimate=cost,
    )(features, lab_row, lab_col, base)

    total = out[0]
    stats = {"base_loss": out[2], "triplet_loss": out[1]}
    return total, stats


def _reference_numpy(features, labels, base_loss):
    """Straight port of the PyTorch forward (dynamic boolean indexing)."""
    f = np.asarray(features, np.float64)
    lab = np.asarray(labels)
    nmask, vmask = lab == 0, lab == 2
    if not nmask.any() or not vmask.any():
        return float(base_loss), 0.0
    N = f[nmask]
    V = f[vmask]
    N = N / np.maximum(np.linalg.norm(N, axis=1, keepdims=True), NORM_EPS)
    V = V / np.maximum(np.linalg.norm(V, axis=1, keepdims=True), NORM_EPS)
    nc = N.mean(axis=0, keepdims=True)
    vc = V.mean(axis=0, keepdims=True)

    def pdist(a, b):
        return np.linalg.norm(a - b + PD_EPS, axis=1)

    triplet = 0.0
    triplet += np.maximum(pdist(N, nc) - pdist(N, vc) + MARGIN, 0.0).mean()
    triplet += np.maximum(pdist(V, vc) - pdist(V, nc) + MARGIN, 0.0).mean()
    total = float(base_loss) + LAMBDA_TRIPLET * triplet
    return total, triplet


if __name__ == "__main__":
    B, H = 8, 32
    key = jax.random.PRNGKey(0)
    features = jax.random.normal(key, (B, H), dtype=jnp.float32)
    labels = jnp.array([0, 2, 1, 0, 2, 2, 0, 1], dtype=jnp.int32)   # mix of 0/1/2
    base_loss = jnp.float32(0.7310586)

    total, stats = violation_normal_triplet_loss(features, labels, base_loss)
    total = jax.block_until_ready(total)

    ref_total, ref_triplet = _reference_numpy(features, labels, float(base_loss))
    np.testing.assert_allclose(float(total), ref_total, rtol=1e-4, atol=1e-4)
    np.testing.assert_allclose(float(stats["triplet_loss"]), ref_triplet, rtol=1e-4, atol=1e-4)
    np.testing.assert_allclose(float(stats["base_loss"]), float(base_loss), rtol=1e-6, atol=1e-6)

    # Early-exit path: no violation samples -> total == base_loss, triplet == 0.
    labels2 = jnp.array([0, 0, 1, 0, 1, 0, 0, 1], dtype=jnp.int32)
    total2, stats2 = violation_normal_triplet_loss(features, labels2, base_loss)
    total2 = jax.block_until_ready(total2)
    np.testing.assert_allclose(float(total2), float(base_loss), rtol=1e-6, atol=1e-6)
    np.testing.assert_allclose(float(stats2["triplet_loss"]), 0.0, atol=1e-7)

    print("KERNEL_OK")
</pallas_src>

<mosaic_0001>
module attributes {stable_mosaic.version = 11 : i64} {
  func.func @_vn_triplet_kernel(%arg0: memref<8x32xf32, #tpu.memory_space<vmem>>, %arg1: memref<8x1xi32, #tpu.memory_space<vmem>>, %arg2: memref<1x8xi32, #tpu.memory_space<vmem>>, %arg3: memref<1xf32, #tpu.memory_space<smem>>, %arg4: memref<3xf32, #tpu.memory_space<smem>>) attributes {dimension_semantics = [], scalar_prefetch = 0 : i64, scratch_operands = 0 : i64, tpu.core_type = #tpu.core_type<tc>} {
    %c0 = arith.constant 0 : index
    %c0_0 = arith.constant 0 : index
    %0 = vector.load %arg0[%c0, %c0_0] : memref<8x32xf32, #tpu.memory_space<vmem>>, vector<8x32xf32>
    %1 = arith.mulf %0, %0 : vector<8x32xf32>
    %cst = arith.constant dense<0.000000e+00> : vector<8xf32>
    %2 = vector.multi_reduction <add>, %1, %cst [1] : vector<8x32xf32> to vector<8xf32>
    %3 = vector.shape_cast %2 : vector<8xf32> to vector<8x1xf32>
    %cst_1 = arith.constant 1.000000e-24 : f32
    %4 = vector.broadcast %cst_1 : f32 to vector<8x1xf32>
    %5 = arith.maximumf %3, %4 : vector<8x1xf32>
    %6 = math.rsqrt %5 : vector<8x1xf32>
    %7 = vector.broadcast %6 : vector<8x1xf32> to vector<8x32xf32>
    %8 = arith.mulf %0, %7 : vector<8x32xf32>
    %c0_2 = arith.constant 0 : index
    %c0_3 = arith.constant 0 : index
    %9 = vector.load %arg1[%c0_2, %c0_3] : memref<8x1xi32, #tpu.memory_space<vmem>>, vector<8x1xi32>
    %c0_4 = arith.constant 0 : index
    %c0_5 = arith.constant 0 : index
    %10 = vector.load %arg2[%c0_4, %c0_5] : memref<1x8xi32, #tpu.memory_space<vmem>>, vector<1x8xi32>
    %c0_i32 = arith.constant 0 : i32
    %11 = vector.broadcast %c0_i32 : i32 to vector<8x1xi32>
    %12 = arith.cmpi eq, %9, %11 : vector<8x1xi32>
    %c2_i32 = arith.constant 2 : i32
    %13 = vector.broadcast %c2_i32 : i32 to vector<8x1xi32>
    %14 = arith.cmpi eq, %9, %13 : vector<8x1xi32>
    %15 = tpu.iota {dimensions = array<i32: 0>} : vector<2x8xi32>
    %16 = vector.shape_cast %10 : vector<1x8xi32> to vector<1x8xi32>
    %17 = vector.broadcast %16 : vector<1x8xi32> to vector<2x8xi32>
    %c2_i32_6 = arith.constant 2 : i32
    %18 = vector.broadcast %c2_i32_6 : i32 to vector<2x8xi32>
    %19 = arith.muli %15, %18 : vector<2x8xi32>
    %20 = arith.cmpi eq, %17, %19 : vector<2x8xi32>
    %21 = arith.extui %20 : vector<2x8xi1> to vector<2x8xi32>
    %22 = arith.sitofp %21 : vector<2x8xi32> to vector<2x8xf32>
    %cst_7 = arith.constant dense<0.000000e+00> : vector<2x32xf32>
    %23 = tpu.matmul %22, %8, %cst_7 {dimension_numbers = #tpu.dot_dimension_numbers<[1], [0], [0], [1], [0, 0, 1, 1], [], []>} : vector<2x8xf32>, vector<8x32xf32>, vector<2x32xf32> -> vector<2x32xf32>
    %24 = vector.extract_strided_slice %22 {offsets = [0, 0], sizes = [1, 8], strides = [1, 1]} : vector<2x8xf32> to vector<1x8xf32>
    %25 = vector.shape_cast %24 : vector<1x8xf32> to vector<1x1x8xf32>
    %cst_8 = arith.constant dense<0.000000e+00> : vector<1xf32>
    %26 = vector.multi_reduction <add>, %25, %cst_8 [1, 2] : vector<1x1x8xf32> to vector<1xf32>
    %27 = vector.shape_cast %26 : vector<1xf32> to vector<1x1x1xf32>
    %28 = vector.extract %27[0, 0, 0] : f32 from vector<1x1x1xf32>
    %29 = vector.extract_strided_slice %22 {offsets = [1, 0], sizes = [1, 8], strides = [1, 1]} : vector<2x8xf32> to vector<1x8xf32>
    %30 = vector.shape_cast %29 : vector<1x8xf32> to vector<1x1x8xf32>
    %cst_9 = arith.constant dense<0.000000e+00> : vector<1xf32>
    %31 = vector.multi_reduction <add>, %30, %cst_9 [1, 2] : vector<1x1x8xf32> to vector<1xf32>
    %32 = vector.shape_cast %31 : vector<1xf32> to vector<1x1x1xf32>
    %33 = vector.extract %32[0, 0, 0] : f32 from vector<1x1x1xf32>
    %34 = vector.extract_strided_slice %23 {offsets = [0, 0], sizes = [1, 32], strides = [1, 1]} : vector<2x32xf32> to vector<1x32xf32>
    %cst_10 = arith.constant 1.000000e+00 : f32
    %35 = arith.maximumf %28, %cst_10 : f32
    %36 = vector.broadcast %35 : f32 to vector<1x32xf32>
    %37 = arith.divf %34, %36 : vector<1x32xf32>
    %38 = vector.extract_strided_slice %23 {offsets = [1, 0], sizes = [1, 32], strides = [1, 1]} : vector<2x32xf32> to vector<1x32xf32>
    %cst_11 = arith.constant 1.000000e+00 : f32
    %39 = arith.maximumf %33, %cst_11 : f32
    %40 = vector.broadcast %39 : f32 to vector<1x32xf32>
    %41 = arith.divf %38, %40 : vector<1x32xf32>
    %42 = vector.broadcast %37 : vector<1x32xf32> to vector<8x32xf32>
    %43 = arith.subf %8, %42 : vector<8x32xf32>
    %cst_12 = arith.constant 9.99999997E-7 : f32
    %44 = vector.broadcast %cst_12 : f32 to vector<8x32xf32>
    %45 = arith.addf %43, %44 : vector<8x32xf32>
    %46 = vector.broadcast %41 : vector<1x32xf32> to vector<8x32xf32>
    %47 = arith.subf %8, %46 : vector<8x32xf32>
    %cst_13 = arith.constant 9.99999997E-7 : f32
    %48 = vector.broadcast %cst_13 : f32 to vector<8x32xf32>
    %49 = arith.addf %47, %48 : vector<8x32xf32>
    %50 = arith.mulf %45, %45 : vector<8x32xf32>
    %cst_14 = arith.constant dense<0.000000e+00> : vector<8xf32>
    %51 = vector.multi_reduction <add>, %50, %cst_14 [1] : vector<8x32xf32> to vector<8xf32>
    %52 = vector.shape_cast %51 : vector<8xf32> to vector<8x1xf32>
    %53 = math.sqrt %52 : vector<8x1xf32>
    %54 = arith.mulf %49, %49 : vector<8x32xf32>
    %cst_15 = arith.constant dense<0.000000e+00> : vector<8xf32>
    %55 = vector.multi_reduction <add>, %54, %cst_15 [1] : vector<8x32xf32> to vector<8xf32>
    %56 = vector.shape_cast %55 : vector<8xf32> to vector<8x1xf32>
    %57 = math.sqrt %56 : vector<8x1xf32>
    %58 = arith.subf %53, %57 : vector<8x1xf32>
    %cst_16 = arith.constant 1.000000e+00 : f32
    %59 = vector.broadcast %cst_16 : f32 to vector<8x1xf32>
    %60 = arith.addf %58, %59 : vector<8x1xf32>
    %cst_17 = arith.constant 0.000000e+00 : f32
    %61 = vector.broadcast %cst_17 : f32 to vector<8x1xf32>
    %62 = arith.maximumf %60, %61 : vector<8x1xf32>
    %cst_18 = arith.constant 0.000000e+00 : f32
    %63 = vector.broadcast %cst_18 : f32 to vector<8x1xf32>
    %64 = arith.select %12, %62, %63 : vector<8x1xi1>, vector<8x1xf32>
    %65 = arith.subf %57, %53 : vector<8x1xf32>
    %cst_19 = arith.constant 1.000000e+00 : f32
    %66 = vector.broadcast %cst_19 : f32 to vector<8x1xf32>
    %67 = arith.addf %65, %66 : vector<8x1xf32>
    %cst_20 = arith.constant 0.000000e+00 : f32
    %68 = vector.broadcast %cst_20 : f32 to vector<8x1xf32>
    %69 = arith.maximumf %67, %68 : vector<8x1xf32>
    %cst_21 = arith.constant 0.000000e+00 : f32
    %70 = vector.broadcast %cst_21 : f32 to vector<8x1xf32>
    %71 = arith.select %14, %69, %70 : vector<8x1xi1>, vector<8x1xf32>
    %72 = vector.shape_cast %64 : vector<8x1xf32> to vector<1x8x1xf32>
    %cst_22 = arith.constant dense<0.000000e+00> : vector<1xf32>
    %73 = vector.multi_reduction <add>, %72, %cst_22 [1, 2] : vector<1x8x1xf32> to vector<1xf32>
    %74 = vector.shape_cast %73 : vector<1xf32> to vector<1x1x1xf32>
    %75 = vector.extract %74[0, 0, 0] : f32 from vector<1x1x1xf32>
    %cst_23 = arith.constant 1.000000e+00 : f32
    %76 = arith.maximumf %28, %cst_23 : f32
    %77 = arith.divf %75, %76 : f32
    %78 = vector.shape_cast %71 : vector<8x1xf32> to vector<1x8x1xf32>
    %cst_24 = arith.constant dense<0.000000e+00> : vector<1xf32>
    %79 = vector.multi_reduction <add>, %78, %cst_24 [1, 2] : vector<1x8x1xf32> to vector<1xf32>
    %80 = vector.shape_cast %79 : vector<1xf32> to vector<1x1x1xf32>
    %81 = vector.extract %80[0, 0, 0] : f32 from vector<1x1x1xf32>
    %cst_25 = arith.constant 1.000000e+00 : f32
    %82 = arith.maximumf %33, %cst_25 : f32
    %83 = arith.divf %81, %82 : f32
    %84 = arith.addf %77, %83 : f32
    %c0_26 = arith.constant 0 : index
    %85 = memref.load %arg3[%c0_26] : memref<1xf32, #tpu.memory_space<smem>>
    %cst_27 = arith.constant 0.000000e+00 : f32
    %86 = arith.cmpf ogt, %28, %cst_27 : f32
    %cst_28 = arith.constant 0.000000e+00 : f32
    %87 = arith.cmpf ogt, %33, %cst_28 : f32
    %88 = arith.andi %86, %87 : i1
    %cst_29 = arith.constant 2.000000e-01 : f32
    %89 = arith.mulf %cst_29, %84 : f32
    %90 = arith.addf %85, %89 : f32
    %91 = arith.select %88, %90, %85 : f32
    %c0_30 = arith.constant 0 : index
    %92 = memref.load %arg4[%c0_30] : memref<3xf32, #tpu.memory_space<smem>>
    memref.store %91, %arg4[%c0_30] : memref<3xf32, #tpu.memory_space<smem>>
    %cst_31 = arith.constant 0.000000e+00 : f32
    %93 = arith.select %88, %84, %cst_31 : f32
    %c1 = arith.constant 1 : index
    %94 = memref.load %arg4[%c1] : memref<3xf32, #tpu.memory_space<smem>>
    memref.store %93, %arg4[%c1] : memref<3xf32, #tpu.memory_space<smem>>
    %c2 = arith.constant 2 : index
    %95 = memref.load %arg4[%c2] : memref<3xf32, #tpu.memory_space<smem>>
    memref.store %85, %arg4[%c2] : memref<3xf32, #tpu.memory_space<smem>>
    return
  }
}

</mosaic_0001>

<bundles_post_ra>
// kernel: violation_normal_triplet_loss.1
= control target key start
LH: loop header
LB: loop body
LE: loop exit
PB: predicated region body
PF: predicated region fallthrough
CT: control target
= control target key end

     0   :  { %vm21_vm0 = vcmask 261120   ;;  %v41_v1 = vlaneseq  ;;  %s373_s0 = inlined_call_operand.vmem [shape: f32[8,32], index: 0, kind: input, shape index: {}]   ;;  %s374_s1 = inlined_call_operand.vmem [shape: s32[8,1], index: 1, kind: input, shape index: {}]   ;;  %s375_s2 = inlined_call_operand.vmem [shape: s32[1,8], index: 2, kind: input, shape index: {}]   ;;  %s376_s3 = inlined_call_operand.<no memory space> [shape: f32[1], index: 3, kind: input, shape index: {}]   ;;  %s377_s4 = inlined_call_operand.vmem [shape: f32[3], index: 4, kind: output, shape index: {}]  }
   0x1   :  { %v19_v0 = vld [vmem:[%s373_s0] sm:$0xff] }
   0x2   :  { %v20_v2 = vmul.f32 %v19_v0, %v19_v0 }
   0x3   :  { %10 = vsyncpa [#allocation4], 0  ;;  %245 = sst [smem:[#allocation3 + $0x2]] %s376_s3  ;;  %v42_v3 = vshrl.u32 %v41_v1, 7  ;;  %v280_v4 = vld [vmem:[%s375_s2] ss:$0 sm:$0xff] }
   0x4   :  { %v22_v5 = vsel %vm21_vm0, %v20_v2, 0.0  ;;  %vm72_vm2 = vcmask 57344   ;;  %v305_v7 = vmov 0.0   ;;  %vm48_vm6 = vcmask 64512   ;;  %s306_s21 = smov 1.0   ;;  %s251_s9 = sshll.u32 %s377_s4, 4  ;;  %s252_s9 = int_to_ptr.vmem [resolvable:$true] %s251_s9 }
   0x5   :  { %23 = vadd.xlane.f32.xlu0 %v22_v5  ;;  %v44_v6 = vmul.u32 2, %v42_v3  ;;  %s307_s15 = smov [#allocation3]  }
   0x7   :  { %vm45_vm1 = vcmp.eq.s32.totalorder %v280_v4, %v44_v6 }
   0x8   :  { %v261_v8 = vsel %vm45_vm1, 1.0, %v305_v7 }
   0x9   :  { %v83_v9 = vrot.slane %v261_v8, 1  ;;  %v73_v10 = vsel %vm72_vm2, %v261_v8, 0.0 }
   0xb   :  { %v85_v11 = vsel %vm72_vm2, %v83_v9, 0.0 }
   0xc   :  { %86 = vadd.xlane.f32.xlu1 %v85_v11 }
   0xd   :  { %74 = vadd.xlane.f32.xlu0 %v73_v10 }
  0x78   :  { %v24_v12 = vpop.xlane.xlu0 %23 }
  0x79   :  { %v25_v13 = vmax.f32 %v24_v12, 1e-24 }
  0x7b   :  { %281 = vrsqrt.f32 %v25_v13  ;;  %vm32_vm4 = vweird.f32 %v25_v13 }
  0x7f   :  { %v87_v14 = vpop.xlane.xlu1 %86 }
  0x80   :  { %v88_v15 = vrot.slane %v87_v14, 4  ;;  %v75_v16 = vpop.xlane.xlu0 %74 }
  0x81   :  { %v282_v17 = vpop.eup %281  ;;  %v76_v18 = vrot.slane %v75_v16, 4 }
  0x82   :  { %v27_v19 = vmul.f32 %v282_v17, %v25_v13  ;;  %v89_v20 = vadd.f32 %v88_v15, %v87_v14  ;;  %vm33_vm3 = vweird.f32 %v282_v17 }
  0x83   :  { %v77_v21 = vadd.f32 %v76_v18, %v75_v16  ;;  %vm34_vm5 = vmor %vm32_vm4, %vm33_vm3 }
  0x84   :  { %v28_v22 = vmul.f32 %v282_v17, %v27_v19  ;;  %v90_v23 = vrot.slane %v89_v20, 2 }
  0x85   :  { %v78_v24 = vrot.slane %v77_v21, 2 }
  0x86   :  { %v29_v25 = vmul.f32 0.5, %v28_v22  ;;  %v91_v26 = vadd.f32 %v90_v23, %v89_v20 }
  0x87   :  { %v79_v27 = vadd.f32 %v78_v24, %v77_v21 }
  0x88   :  { %v30_v28 = vsub.f32 1.5, %v29_v25  ;;  %v92_v29 = vrot.slane %v91_v26, 1 }
  0x89   :  { %v80_v30 = vrot.slane %v79_v27, 1 }
  0x8a   :  { %v31_v31 = vmul.f32 %v282_v17, %v30_v28  ;;  %v93_v32 = vadd.f32 %v92_v29, %v91_v26  ;;  %v37_v29 = vld [vmem:[%s374_s1] sm:$0xff] }
  0x8b   :  { %v81_v33 = vadd.f32 %v80_v30, %v79_v27  ;;  %vm40_vm3 = vcmp.eq.s32.totalorder %v37_v29, 2  ;;  %vm39_vm4 = vcmp.eq.s32.totalorder %v37_v29, 0 }
  0x8c   :  { %v35_v34 = vsel %vm34_vm5, %v282_v17, %v31_v31  ;;  %vm175_vm5 = vcmask 7168  }
  0x8d   :  { %v36_v35 = vmul.f32 %v35_v34, %v19_v0  ;;  %265 = vpush %v81_v33 }
  0x8e   :  { %267 = vpush %v93_v32 }
  0x8f   :  { %67 = vmatpush.msra.mxu0 %v36_v35 }
  0x90   :  { %262 = vmatmul.msk.f32.vlgmr.msra.gmra.mxu0 %vm48_vm6, %v261_v8 }
  0xbe   :  { %s343_s0 = spop %265 }
  0xbf   :  { %s345_s2 = spop %267  ;;  %s95_s22 = smax.f32 %s306_s21, %s343_s0 }
  0xc0   :  { %s112_s23 = smax.f32 %s306_s21, %s345_s2  ;;  %v96_v36 = vstv %s95_s22  ;;  %p232_p0 = scmp.gt.f32.partialorder %s343_s0, 0.0 }
  0xc1   :  { %v113_v37 = vstv %s112_s23  ;;  %283 = vrcp.f32 %v96_v36  ;;  %vm102_vm7 = vweird.f32 %v96_v36  ;;  %v108_v46 = vand.u32 2147483648, %v96_v36  ;;  %p233_p1 = scmp.gt.f32.partialorder %s345_s2, 0.0 }
  0xc2   :  { %285 = vrcp.f32 %v113_v37  ;;  %vm119_vm9 = vweird.f32 %v113_v37  ;;  %v125_v47 = vand.u32 2147483648, %v113_v37  ;;  %v106_v49 = vand.u32 2147483647, %v96_v36 }
  0xc3   :  { %v123_v51 = vand.u32 2147483647, %v113_v37  ;;  %v109_v52 = vor.u32 1.1754944e-38, %v108_v46  ;;  %p234_p2 = pnand %p233_p1, %p232_p0 }
  0xc4   :  { %v126_v53 = vor.u32 1.1754944e-38, %v125_v47  ;;  %vm107_vm13 = vcmp.eq.f32.partialorder %v106_v49, 8.507059e+37 }
  0xc5   :  { %vm124_vm14 = vcmp.eq.f32.partialorder %v123_v51, 8.507059e+37 }
  0xc7   :  { %v284_v38 = vpop.eup %283 }
  0xc8   :  { %v286_v39 = vpop.eup %285  ;;  %v98_v40 = vmul.f32 %v284_v38, %v96_v36  ;;  %vm103_vm8 = vweird.f32 %v284_v38 }
  0xc9   :  { %v115_v41 = vmul.f32 %v286_v39, %v113_v37  ;;  %vm120_vm10 = vweird.f32 %v286_v39  ;;  %vm104_vm11 = vmor %vm102_vm7, %vm103_vm8 }
  0xca   :  { %v99_v42 = vsub.f32 1.0, %v98_v40  ;;  %vm121_vm12 = vmor %vm119_vm9, %vm120_vm10 }
  0xcb   :  { %v116_v43 = vsub.f32 1.0, %v115_v41 }
  0xcc   :  { %v100_v44 = vmul.f32 %v284_v38, %v99_v42 }
  0xcd   :  { %v117_v45 = vmul.f32 %v286_v39, %v116_v43 }
  0xce   :  { %v101_v48 = vadd.f32 %v284_v38, %v100_v44 }
  0xcf   :  { %v118_v50 = vadd.f32 %v286_v39, %v117_v45 }
  0xd0   :  { %v105_v54 = vsel %vm104_vm11, %v284_v38, %v101_v48 }
  0xd1   :  { %v122_v55 = vsel %vm121_vm12, %v286_v39, %v118_v50  ;;  %v349_v57 = vsel %vm107_vm13, %v109_v52, %v105_v54 }
  0xd2   :  { %v351_v58 = vsel %vm124_vm14, %v126_v53, %v122_v55 }
 0x10d   :  { %v69_v56 = vpop.f32.mrf.mxu0 }
 0x10e   :  { %v111_v59 = vmul.f32 %v349_v57, %v69_v56  ;;  %v128_v60 = vmul.f32 %v351_v58, %v69_v56 }
 0x110   :  { %v129_v61 = vperm.slane %v111_v59, 0  ;;  %v132_v62 = vperm.slane %v128_v60, 1 }
 0x112   :  { %v130_v63 = vsub.f32 %v36_v35, %v129_v61  ;;  %v133_v0 = vsub.f32 %v36_v35, %v132_v62 }
 0x114   :  { %v131_v1 = vadd.f32 1e-06, %v130_v63  ;;  %v134_v2 = vadd.f32 1e-06, %v133_v0 }
 0x116   :  { %v135_v3 = vmul.f32 %v131_v1, %v131_v1  ;;  %v151_v4 = vmul.f32 %v134_v2, %v134_v2 }
 0x118   :  { %v136_v5 = vsel %vm21_vm0, %v135_v3, 0.0  ;;  %v152_v6 = vsel %vm21_vm0, %v151_v4, 0.0 }
 0x119   :  { %137 = vadd.xlane.f32.xlu1 %v136_v5  ;;  %153 = vadd.xlane.f32.xlu2 %v152_v6 }
 0x18c   :  { %v138_v7 = vpop.xlane.xlu1 %137  ;;  %v154_v8 = vpop.xlane.xlu2 %153 }
 0x18d   :  { %287 = vrsqrt.f32 %v138_v7  ;;  %vm146_vm15 = vcmp.eq.f32.partialorder %v138_v7, inf  ;;  %v149_v22 = vand.u32 2147483648, %v138_v7  ;;  %vm148_vm0 = vcmp.eq.f32.partialorder %v138_v7, 0.0 }
 0x18e   :  { %289 = vrsqrt.f32 %v154_v8  ;;  %vm162_vm1 = vcmp.eq.f32.partialorder %v154_v8, inf  ;;  %v165_v25 = vand.u32 2147483648, %v154_v8  ;;  %vm164_vm2 = vcmp.eq.f32.partialorder %v154_v8, 0.0 }
 0x193   :  { %v288_v9 = vpop.eup %287 }
 0x194   :  { %v290_v10 = vpop.eup %289  ;;  %v140_v11 = vmul.f32 %v288_v9, %v138_v7 }
 0x195   :  { %v156_v12 = vmul.f32 %v290_v10, %v154_v8 }
 0x196   :  { %v141_v13 = vmul.f32 %v288_v9, %v140_v11 }
 0x197   :  { %v157_v14 = vmul.f32 %v290_v10, %v156_v12 }
 0x198   :  { %v142_v15 = vmul.f32 0.5, %v141_v13 }
 0x199   :  { %v158_v16 = vmul.f32 0.5, %v157_v14 }
 0x19a   :  { %v143_v17 = vsub.f32 1.5, %v142_v15 }
 0x19b   :  { %v159_v18 = vsub.f32 1.5, %v158_v16 }
 0x19c   :  { %v144_v19 = vmul.f32 %v288_v9, %v143_v17 }
 0x19d   :  { %v160_v20 = vmul.f32 %v290_v10, %v159_v18 }
 0x19e   :  { %v145_v21 = vmul.f32 %v144_v19, %v138_v7 }
 0x19f   :  { %v161_v23 = vmul.f32 %v160_v20, %v154_v8 }
 0x1a0   :  { %v147_v24 = vsel %vm146_vm15, %v138_v7, %v145_v21 }
 0x1a1   :  { %v150_v26 = vsel %vm148_vm0, %v149_v22, %v147_v24  ;;  %v163_v27 = vsel %vm162_vm1, %v154_v8, %v161_v23 }
 0x1a2   :  { %v166_v28 = vsel %vm164_vm2, %v165_v25, %v163_v27 }
 0x1a3   :  { %v171_v30 = vsub.f32 %v166_v28, %v150_v26  ;;  %v167_v31 = vsub.f32 %v150_v26, %v166_v28 }
 0x1a5   :  { %v172_v32 = vadd.f32 1.0, %v171_v30  ;;  %v168_v33 = vadd.f32 1.0, %v167_v31 }
 0x1a7   :  { %v173_v34 = vmax.f32 %v172_v32, 0.0  ;;  %v169_v35 = vmax.f32 %v168_v33, 0.0 }
 0x1a9   :  { %v174_v36 = vsel %vm40_vm3, %v173_v34, 0.0  ;;  %v170_v37 = vsel %vm39_vm4, %v169_v35, 0.0 }
 0x1aa   :  { %v203_v38 = vsel %vm175_vm5, %v174_v36, 0.0  ;;  %v176_v39 = vsel %vm175_vm5, %v170_v37, 0.0 }
 0x1ab   :  { %204 = vadd.xlane.f32.xlu0 %v203_v38  ;;  %177 = vadd.xlane.f32.xlu2 %v176_v39 }
 0x21e   :  { %v205_v40 = vpop.xlane.xlu0 %204  ;;  %v178_v41 = vpop.xlane.xlu2 %177 }
 0x21f   :  { %v206_v42 = vrot.slane %v205_v40, 4  ;;  %v179_v43 = vrot.slane %v178_v41, 4 }
 0x221   :  { %v207_v44 = vadd.f32 %v206_v42, %v205_v40  ;;  %v180_v45 = vadd.f32 %v179_v43, %v178_v41 }
 0x223   :  { %v208_v46 = vrot.slane %v207_v44, 2  ;;  %v181_v47 = vrot.slane %v180_v45, 2 }
 0x225   :  { %v209_v48 = vadd.f32 %v208_v46, %v207_v44  ;;  %v182_v49 = vadd.f32 %v181_v47, %v180_v45 }
 0x227   :  { %v183_v50 = vrot.slane %v182_v49, 1  ;;  %v210_v51 = vrot.slane %v209_v48, 1 }
 0x229   :  { %v184_v52 = vadd.f32 %v183_v50, %v182_v49  ;;  %v211_v53 = vadd.f32 %v210_v51, %v209_v48 }
 0x22b   :  { %269 = vpush %v184_v52 }
 0x22c   :  { %271 = vpush %v349_v57 }
 0x22d   :  { %273 = vpush %v211_v53 }
 0x22e   :  { %275 = vpush %v351_v58 }
 0x25c   :  { %s270_s1 = spop %269 }
 0x25d   :  { %s272_s26 = spop %271 }
 0x25e   :  { %s202_s27 = smul.f32 %s272_s26, %s270_s1  ;;  %s274_s28 = spop %273 }
 0x25f   :  { %s276_s29 = spop %275 }
 0x260   :  { %s229_s30 = smul.f32 %s276_s29, %s274_s28 }
 0x262   :  { %s230_s5 = sadd.f32 %s229_s30, %s202_s27 }
 0x264   :  { %s236_s6 = smul.f32 0.2, %s230_s5  ;;  %s379_s5 = smov (%p234_p2, %s230_s5), 0.0 }
 0x265   :  { %243 = sst [smem:[#allocation3 + $0x1]] %s379_s5 }
 0x266   :  { %s237_s12 = sadd.f32 %s236_s6, %s376_s3 }
 0x268   :  { %s381_s3 = smov (!%p234_p2, %s376_s3), %s237_s12 }
 0x269   :  { %240 = sst [smem:[#allocation3]] %s381_s3 }
 0x26a   :  { %254 = dma.smem_to_vmem %s307_s15, 16, %s252_s9, [#allocation4]  }
 0x26b   :  { %303 = dma.done.wait [#allocation4], 16  }
 0x26c   :  { %304 = vsyncadd [#allocation4], 4294967280 }
 0x26d   :  { %259 = sfence }
 0x26e   :  { %260 = vsyncpa [#allocation4], 1 }

</bundles_post_ra>
